<compile_context>
chip_gen: v7x
topology: tpu7x:2x2x1
jax: 0.10.0
libtpu: 0.0.40
codegen_flags: <defaults>
</compile_context>

<pallas_src>
import jax
import jax.numpy as jnp
from jax import lax
from jax.experimental import pallas as pl
from jax.experimental.pallas import tpu as pltpu

IN_FEATURES = 10
OUT_FEATURES = 20

# Per batch row, padded (8,128)-tiled VMEM bytes: the (tb, 10) x block and the
# (tb, 20) output block each physically occupy tb * 128 lanes * 4 B.
_PADDED_BYTES_PER_ROW = 2 * 128 * 4          # x block + out block, per row
_SINGLE_BLOCK_MAX_B = 4096                    # ~4 MiB padded: launch-bound regime only


def _round_up(n, m):
    return ((n + m - 1) // m) * m


def _default_batch_tile():
    """Per-generation batch tile sized from padded-VMEM budget / HBM roofline."""
    try:
        kind = jax.devices()[0].device_kind.lower()
    except Exception:
        kind = ""
    if "v5" in kind:
        # ~8 MiB double-buffered padded footprint: fits v5e's 16 MiB scoped default.
        return 4096
    # v6e / v7x: ~16 MiB double-buffered, well under scoped limits, big enough
    # (>~1 MB useful bytes/step) to amortize the ~0.35 us step overhead.
    return 8192


def linear_kernel(x_ref, w_ref, b_ref, o_ref):
    # x: (tb, IN), w: (OUT, IN) -- contract the IN dims directly on the MXU
    # (transposed operand is free on the MXU; no wrapper-side weight.T).
    acc = lax.dot_general(
        x_ref[...], w_ref[...],
        dimension_numbers=(((1,), (1,)), ((), ())),
        preferred_element_type=jnp.float32,
    )
    o_ref[...] = (acc + b_ref[...]).astype(o_ref.dtype)


def _cost(B):
    flops = 2 * B * IN_FEATURES * OUT_FEATURES
    bytes_accessed = 4 * (B * IN_FEATURES                 # x
                          + OUT_FEATURES * IN_FEATURES    # weight
                          + OUT_FEATURES                  # bias
                          + B * OUT_FEATURES)             # output
    return pl.CostEstimate(flops=flops, transcendentals=0,
                           bytes_accessed=bytes_accessed)


def _forward_single_block(x, weight, b2d):
    """No grid, no pipeline: whole (small-B) problem in one VMEM-resident block."""
    B = x.shape[0]
    # Padded footprint (~B KiB for x + out) plus weight/bias tiles + headroom.
    vmem_bytes = max(B * _PADDED_BYTES_PER_ROW + (2 << 20), 16 << 20)
    return pl.pallas_call(
        linear_kernel,
        out_shape=jax.ShapeDtypeStruct((B, OUT_FEATURES), x.dtype),
        in_specs=[
            pl.BlockSpec(memory_space=pltpu.MemorySpace.VMEM),
            pl.BlockSpec(memory_space=pltpu.MemorySpace.VMEM),
            pl.BlockSpec(memory_space=pltpu.MemorySpace.VMEM),
        ],
        out_specs=pl.BlockSpec(memory_space=pltpu.MemorySpace.VMEM),
        compiler_params=pltpu.CompilerParams(vmem_limit_bytes=vmem_bytes),
        cost_estimate=_cost(B),
    )(x, weight, b2d)


def _forward_batch_tiled(x, weight, b2d, tb):
    """Grid over the batch dim; weight/bias stay VMEM-resident across steps."""
    B = x.shape[0]  # already a multiple of tb
    num_tiles = B // tb
    # Double-buffered x + out blocks (lane-padded) plus small weight/bias tiles.
    vmem_bytes = max(2 * tb * _PADDED_BYTES_PER_ROW + (2 << 20), 16 << 20)
    return pl.pallas_call(
        linear_kernel,
        out_shape=jax.ShapeDtypeStruct((B, OUT_FEATURES), x.dtype),
        grid_spec=pl.GridSpec(
            grid=(num_tiles,),
            in_specs=[
                pl.BlockSpec((tb, IN_FEATURES), lambda i: (i, 0)),
                pl.BlockSpec((OUT_FEATURES, IN_FEATURES), lambda i: (0, 0)),
                pl.BlockSpec((1, OUT_FEATURES), lambda i: (0, 0)),
            ],
            out_specs=pl.BlockSpec((tb, OUT_FEATURES), lambda i: (i, 0)),
        ),
        compiler_params=pltpu.CompilerParams(
            dimension_semantics=("parallel",),   # shards batch across TCs on v7x
            vmem_limit_bytes=vmem_bytes,
        ),
        cost_estimate=_cost(B),
    )(x, weight, b2d)


def network_a_forward(x, weight, bias):
    """x: (B, IN) f32; weight: (OUT, IN) f32 (PyTorch layout); bias: (OUT,) f32."""
    B = x.shape[0]
    b2d = bias.reshape(1, OUT_FEATURES)  # 2-D for VPU broadcast

    if B <= _SINGLE_BLOCK_MAX_B:
        return _forward_single_block(x, weight, b2d)

    tb = _default_batch_tile()
    # Keep at least 2 grid steps so "parallel" can use both TCs on v7x.
    tb = min(tb, _round_up((B + 1) // 2, 256))
    B_pad = _round_up(B, tb)
    if B_pad != B:
        x = jnp.pad(x, ((0, B_pad - B), (0, 0)))
    out = _forward_batch_tiled(x, weight, b2d, tb)
    return out[:B] if B_pad != B else out


if __name__ == "__main__":
    key = jax.random.PRNGKey(0)
    kx, kw, kb, kx2 = jax.random.split(key, 4)

    # PyTorch-style uniform(-1/sqrt(fan_in), 1/sqrt(fan_in)) init.
    bound = 1.0 / (IN_FEATURES ** 0.5)
    weight = jax.random.uniform(kw, (OUT_FEATURES, IN_FEATURES),
                                minval=-bound, maxval=bound, dtype=jnp.float32)
    bias = jax.random.uniform(kb, (OUT_FEATURES,),
                              minval=-bound, maxval=bound, dtype=jnp.float32)

    # Small-batch path (no grid).
    B = 8
    x = jax.random.normal(kx, (B, IN_FEATURES), dtype=jnp.float32)
    out = jax.block_until_ready(network_a_forward(x, weight, bias))
    ref = x @ weight.T + bias
    assert out.shape == (B, OUT_FEATURES)
    assert jnp.allclose(out, ref, atol=1e-5, rtol=1e-5)

    # Tiled path with a non-divisible batch (exercises cdiv/pad + 2-step grid).
    B2 = 6000
    x2 = jax.random.normal(kx2, (B2, IN_FEATURES), dtype=jnp.float32)
    out2 = jax.block_until_ready(network_a_forward(x2, weight, bias))
    ref2 = x2 @ weight.T + bias
    assert out2.shape == (B2, OUT_FEATURES)
    assert jnp.allclose(out2, ref2, atol=1e-5, rtol=1e-5)

    print("KERNEL_OK")
</pallas_src>

<mosaic_0001>
module attributes {stable_mosaic.version = 11 : i64} {
  func.func @linear_kernel(%arg0: memref<8x10xf32, #tpu.memory_space<vmem>>, %arg1: memref<20x10xf32, #tpu.memory_space<vmem>>, %arg2: memref<1x20xf32, #tpu.memory_space<vmem>>, %arg3: memref<8x20xf32, #tpu.memory_space<vmem>>) attributes {dimension_semantics = [], scalar_prefetch = 0 : i64, scratch_operands = 0 : i64, tpu.core_type = #tpu.core_type<tc>} {
    %c0 = arith.constant 0 : index
    %c0_0 = arith.constant 0 : index
    %0 = vector.load %arg0[%c0, %c0_0] : memref<8x10xf32, #tpu.memory_space<vmem>>, vector<8x10xf32>
    %c0_1 = arith.constant 0 : index
    %c0_2 = arith.constant 0 : index
    %1 = vector.load %arg1[%c0_1, %c0_2] : memref<20x10xf32, #tpu.memory_space<vmem>>, vector<20x10xf32>
    %cst = arith.constant dense<0.000000e+00> : vector<8x20xf32>
    %2 = tpu.matmul %0, %1, %cst {dimension_numbers = #tpu.dot_dimension_numbers<[1], [1], [0], [0], [0, 0, 1, 0], [], []>} : vector<8x10xf32>, vector<20x10xf32>, vector<8x20xf32> -> vector<8x20xf32>
    %c0_3 = arith.constant 0 : index
    %c0_4 = arith.constant 0 : index
    %3 = vector.load %arg2[%c0_3, %c0_4] : memref<1x20xf32, #tpu.memory_space<vmem>>, vector<1x20xf32>
    %4 = vector.broadcast %3 : vector<1x20xf32> to vector<8x20xf32>
    %5 = arith.addf %2, %4 : vector<8x20xf32>
    %c0_5 = arith.constant 0 : index
    %c0_6 = arith.constant 0 : index
    %6 = vector.load %arg3[%c0_5, %c0_6] : memref<8x20xf32, #tpu.memory_space<vmem>>, vector<8x20xf32>
    tpu.vector_store %arg3[%c0_5, %c0_6], %5 {strides = array<i32>} : memref<8x20xf32, #tpu.memory_space<vmem>>, vector<8x20xf32>,
    return
  }
}

</mosaic_0001>

<bundles_post_ra>
// kernel: tpu_custom_call.1
= control target key start
LH: loop header
LB: loop body
LE: loop exit
PB: predicated region body
PF: predicated region fallthrough
CT: control target
= control target key end

     0   :  { %vm26_vm0 = vcmask 80896   ;;  %v175_v2 = vmov 0.0|0.0   ;;  %vm176_vm2 = vmmov 0   ;;  %v177_v4 = vmov 0.0   ;;  %s226_s0 = inlined_call_operand.vmem [shape: f32[8,10], index: 0, kind: input, shape index: {}]   ;;  %s227_s1 = inlined_call_operand.vmem [shape: f32[20,10], index: 1, kind: input, shape index: {}]   ;;  %s228_s2 = inlined_call_operand.vmem [shape: f32[1,20], index: 2, kind: input, shape index: {}]   ;;  %s229_s3 = inlined_call_operand.hbm [shape: f32[8,20], index: 3, kind: output, shape index: {}]  }
   0x1   :  { %v16_v0 = vld [vmem:[%s227_s1] sm:$0xff]  ;;  %v17_v1 = vld [vmem:[%s227_s1 + $0x8] sm:$0xff]  ;;  %143 = vmatprep.subr.bf16.mxu0 %v175_v2  ;;  %vm145_vm1 = vmpackc.low %vm26_vm0, %vm26_vm0  ;;  %140 = vmatprep.mubr.msk.f32.mxu0 %vm176_vm2, %v177_v4 }
   0x2   :  { %v144_v3 = vpack.c.bf16 %v17_v1, %v16_v0 }
   0x3   :  { %8 = vsyncpa [#allocation3], 0  ;;  %v18_v5 = vld [vmem:[%s227_s1 + $0x10] sm:$0xf]  ;;  %v15_v6 = vld [vmem:[%s226_s0] sm:$0xff]  ;;  %s178_s22 = smov [#allocation2]  }
   0x4   :  { %146 = vmatpush3.bf16.xpose.msk.msra.mxu0 %vm145_vm1, %v144_v3  ;;  %v125_v7 = vld [vmem:[%s228_s2] ss:$0 sm:$0xff]  ;;  %s117_s23 = sshll.u32 %s178_s22, 4  ;;  %vm109_vm3 = vcmask 162816   ;;  %s118_s23 = int_to_ptr.vmem [resolvable:$true] %s117_s23 }
   0x5   :  { %138 = vmatprep.subr.mxu0 %v177_v4  ;;  %s151_s24 = scalar_lea.vmem %s118_s23, 128  ;;  %p156_p1 = scmp.lt.s32.totalorder %s118_s23, %s118_s23 }
   0x6   :  { %p152_p0 = scmp.ne.s32.totalorder %s118_s23, %s151_s24  ;;  %p157_p2 = scmp.lt.s32.totalorder %s151_s24, %s151_s24 }
   0x8   :  { %p158_p3 = por %p157_p2, %p156_p1 }
   0xa   :  { %p159_p4 = pnand %p158_p3, %p152_p0 }
   0xc   :  { %139 = vmatpush3.xpose.msk.msra.mxu0 %vm26_vm0, %v18_v5 }
   0xf   :  { %141 = vmatmul.mubr.msk.f32.vlgmr.msra.gmra.mrb[0].mxu0 %vm26_vm0, %v15_v6 }
  0xe2   :  { %v105_v8 = vpop.f32.mrb[0].mxu0 }
  0xe3   :  { %v106_v9 = vadd.f32 %v125_v7, %v105_v8  ;;  %v142_v10 = vpop.f32.mrb[1].mxu0 }
  0xe5   :  { %110 = vst.msk [vmem:[#allocation2] sm:$0xff] %vm109_vm3, %v106_v9 }
  0xe6   :  { %162 = shalt.err (!%p159_p4)
}
  0xe7   :  { %s163_s25 = scalar_lea.hbm %s229_s3, 128 }
  0xe8   :  { %p164_p5 = scmp.ne.s32.totalorder %s229_s3, %s163_s25  ;;  %p167_p6 = scmp.lt.u32.totalorder %s163_s25, %s229_s3 }
  0xea   :  { %p169_p7 = pnand %p167_p6, %p164_p5 }
  0xec   :  { %172 = shalt.err (!%p169_p7)
}
  0xed   :  { %120 = dma.vmem_to_hbm [thread:$0]  %s118_s23, 128, %s229_s3, [#allocation3]  }
  0xee   :  { %173 = dma.done.wait [#allocation3], 128  }
  0xef   :  { %174 = vsyncadd [#allocation3], 4294967168 }
  0xf0   :  { %124 = vsyncpa [#allocation3], 1 }

</bundles_post_ra>
